<compile_context>
chip_gen: v5e
topology: v5e:2x2
jax: 0.10.0
libtpu: 0.0.40
codegen_flags: <defaults>
</compile_context>

<pallas_src>
import functools
import math

import jax
import jax.numpy as jnp
from jax.experimental import pallas as pl
from jax.experimental.pallas import tpu as pltpu


def _round_up(v, m):
    return ((v + m - 1) // m) * m


# ----------------------------------------------------------------------------
# Pallas kernels
# ----------------------------------------------------------------------------

def _linear_kernel(x_ref, w_ref, b_ref, o_ref, acc_ref, *, relu):
    @pl.when(pl.program_id(2) == 0)
    def _():
        acc_ref[...] = jnp.zeros_like(acc_ref)

    acc_ref[...] += jnp.dot(
        x_ref[...].astype(jnp.bfloat16),
        w_ref[...].astype(jnp.bfloat16),
        preferred_element_type=jnp.float32)

    @pl.when(pl.program_id(2) == pl.num_programs(2) - 1)
    def _():
        y = acc_ref[...] + b_ref[...]
        if relu:
            y = jnp.maximum(y, 0.0)
        o_ref[...] = y


def linear(x, w, b, relu=False):
    """x: (M, K) f32 @ w: (K, N) bf16 + b: (N,) f32 -> (M, N) f32, optional fused ReLU.

    Tiled over (M, N, K) with a VMEM f32 accumulator; N padded to a multiple of 128
    (lane-dense stores), padding stripped before returning."""
    M, K = x.shape
    N = w.shape[1]

    # --- tile selection (block dims are either multiples of (8,128) or full dims) ---
    Mp = _round_up(M, 8)
    if Mp <= 256:
        tm = Mp
    else:
        tm = 256
        Mp = _round_up(M, tm)

    Np = _round_up(N, 128)
    if Np <= 512:
        tn = Np
    else:
        tn = 256
        Np = _round_up(N, tn)

    if K <= 512:
        tk, Kp = K, K
    else:
        tk = 512
        Kp = _round_up(K, tk)

    xp = x if (Mp == M and Kp == K) else jnp.pad(x, ((0, Mp - M), (0, Kp - K)))
    wp = w if (Kp == K and Np == N) else jnp.pad(w, ((0, Kp - K), (0, Np - N)))
    bp = (b if Np == N else jnp.pad(b, (0, Np - N))).reshape(1, Np)

    grid = (Mp // tm, Np // tn, Kp // tk)
    out = pl.pallas_call(
        functools.partial(_linear_kernel, relu=relu),
        out_shape=jax.ShapeDtypeStruct((Mp, Np), jnp.float32),
        grid=grid,
        in_specs=[
            pl.BlockSpec((tm, tk), lambda i, j, k: (i, k)),
            pl.BlockSpec((tk, tn), lambda i, j, k: (k, j)),
            pl.BlockSpec((1, tn), lambda i, j, k: (0, j)),
        ],
        out_specs=pl.BlockSpec((tm, tn), lambda i, j, k: (i, j)),
        scratch_shapes=[pltpu.VMEM((tm, tn), jnp.float32)],
        compiler_params=pltpu.CompilerParams(
            dimension_semantics=("parallel", "parallel", "arbitrary")),
    )(xp, wp, bp)

    if Mp != M or Np != N:
        out = out[:M, :N]
    return out


def _attn_kernel(q_ref, k_ref, v_ref, m_ref, o_ref, *, scale, head, dk):
    # q: (Lq, D), k/v: (Lk, D), m: (Lq, Lk).  All heads handled here; output (Lq, D).
    q = q_ref[...].astype(jnp.bfloat16)
    k = k_ref[...].astype(jnp.bfloat16)
    v = v_ref[...].astype(jnp.bfloat16)
    m = m_ref[...]

    outs = []
    for h in range(head):                     # static unroll over heads
        lo, hi = h * dk, (h + 1) * dk
        qh, kh, vh = q[:, lo:hi], k[:, lo:hi], v[:, lo:hi]
        # scores = qh @ kh^T without an explicit transpose (contracting dims)
        s = jax.lax.dot_general(
            qh, kh, (((1,), (1,)), ((), ())),
            preferred_element_type=jnp.float32) * scale
        s = jnp.where(m == 0.0, -1e9, s)
        s = s - jnp.max(s, axis=-1, keepdims=True)
        e = jnp.exp(s)
        p = e * pl.reciprocal(jnp.sum(e, axis=-1, keepdims=True), approx=True)
        outs.append(jnp.dot(p.astype(jnp.bfloat16), vh,
                            preferred_element_type=jnp.float32))
    o_ref[...] = jnp.concatenate(outs, axis=-1)     # lane-dense (Lq, D) store


def attention_core(q, k, v, mask, head):
    """q: (B,Lq,D), k/v: (B,Lk,D), mask: (B,Lq,Lk) -> (B,Lq,D) with heads folded."""
    B, Lq, D = q.shape
    Lk = k.shape[1]
    dk = D // head
    scale = 1.0 / math.sqrt(dk)
    sq = pl.Squeezed()
    return pl.pallas_call(
        functools.partial(_attn_kernel, scale=scale, head=head, dk=dk),
        out_shape=jax.ShapeDtypeStruct((B, Lq, D), jnp.float32),
        grid=(B,),
        in_specs=[
            pl.BlockSpec((sq, Lq, D), lambda b: (b, 0, 0)),
            pl.BlockSpec((sq, Lk, D), lambda b: (b, 0, 0)),
            pl.BlockSpec((sq, Lk, D), lambda b: (b, 0, 0)),
            pl.BlockSpec((sq, Lq, Lk), lambda b: (b, 0, 0)),
        ],
        out_specs=pl.BlockSpec((sq, Lq, D), lambda b: (b, 0, 0)),
        compiler_params=pltpu.CompilerParams(
            dimension_semantics=("parallel",)),
    )(q, k, v, mask)


def _ln_res_kernel(a_ref, r_ref, g_ref, b_ref, o_ref, *, eps):
    x = a_ref[...] + r_ref[...]
    mu = jnp.mean(x, axis=-1, keepdims=True)
    var = jnp.mean((x - mu) ** 2, axis=-1, keepdims=True)
    y = (x - mu) * jax.lax.rsqrt(var + eps)
    o_ref[...] = y * g_ref[...] + b_ref[...]


def ln_residual(a, r, gamma, beta, eps=1e-5):
    """LayerNorm(a + r) over last dim; a, r: (M, D) f32.  Tiled over rows."""
    M, D = a.shape
    Mp = _round_up(M, 8)
    if Mp <= 512:
        tm = Mp
    else:
        tm = 256
        Mp = _round_up(M, tm)

    ap = a if Mp == M else jnp.pad(a, ((0, Mp - M), (0, 0)))
    rp = r if Mp == M else jnp.pad(r, ((0, Mp - M), (0, 0)))

    out = pl.pallas_call(
        functools.partial(_ln_res_kernel, eps=eps),
        out_shape=jax.ShapeDtypeStruct((Mp, D), jnp.float32),
        grid=(Mp // tm,),
        in_specs=[
            pl.BlockSpec((tm, D), lambda i: (i, 0)),
            pl.BlockSpec((tm, D), lambda i: (i, 0)),
            pl.BlockSpec((1, D), lambda i: (0, 0)),
            pl.BlockSpec((1, D), lambda i: (0, 0)),
        ],
        out_specs=pl.BlockSpec((tm, D), lambda i: (i, 0)),
        compiler_params=pltpu.CompilerParams(dimension_semantics=("parallel",)),
    )(ap, rp, gamma.reshape(1, D), beta.reshape(1, D))
    return out[:M] if Mp != M else out


# ----------------------------------------------------------------------------
# Model glue (matches the PyTorch forward semantics)
# ----------------------------------------------------------------------------

def mha_self(x, mask, p, head):
    """Self-attention: one fused QKV projection of x."""
    B, L, D = x.shape
    qkv = linear(x.reshape(B * L, D), p["wqkv"], p["bqkv"])          # (B*L, 3D)
    q = qkv[:, :D].reshape(B, L, D)
    k = qkv[:, D:2 * D].reshape(B, L, D)
    v = qkv[:, 2 * D:].reshape(B, L, D)
    m = jnp.broadcast_to(mask.astype(jnp.float32), (B, 1, L, L)).reshape(B, L, L)
    o = attention_core(q, k, v, m, head)                             # (B, L, D)
    return linear(o.reshape(B * L, D), p["wo"], p["bo"]).reshape(B, L, D)


def mha_cross(q_in, kv_in, mask, p, head):
    """Cross-attention: q from decoder, fused K/V projection of encoder output."""
    B, Lq, D = q_in.shape
    Lk = kv_in.shape[1]
    q = linear(q_in.reshape(B * Lq, D), p["wq"], p["bq"]).reshape(B, Lq, D)
    kv = linear(kv_in.reshape(B * Lk, D), p["wkv"], p["bkv"])        # (B*Lk, 2D)
    k = kv[:, :D].reshape(B, Lk, D)
    v = kv[:, D:].reshape(B, Lk, D)
    m = jnp.broadcast_to(mask.astype(jnp.float32), (B, 1, Lq, Lk)).reshape(B, Lq, Lk)
    o = attention_core(q, k, v, m, head)
    return linear(o.reshape(B * Lq, D), p["wo"], p["bo"]).reshape(B, Lq, D)


def transformer_block(q, kv, mask, p, head):
    B, L, D = q.shape
    attn = mha_cross(q, kv, mask, p["attn"], head)
    regular = ln_residual(attn.reshape(B * L, D), q.reshape(B * L, D),
                          p["ln1_g"], p["ln1_b"])                    # dropout -> identity
    ff = linear(regular, p["w1"], p["b1"], relu=True)
    ff = linear(ff, p["w2"], p["b2"])
    out = ln_residual(ff, regular, p["ln2_g"], p["ln2_b"])           # dropout -> identity
    return out.reshape(B, L, D)


def decoder_block(x, enc, src_mask, trg_mask, p, head):
    B, L, D = x.shape
    attn = mha_self(x, trg_mask, p["self_attn"], head)
    query = ln_residual(attn.reshape(B * L, D), x.reshape(B * L, D),
                        p["norm_g"], p["norm_b"]).reshape(B, L, D)   # dropout -> identity
    return transformer_block(query, enc, src_mask, p["tblock"], head)


def decoder_forward(tokens, encoder_output, src_mask, trg_mask, params, head):
    B, L = tokens.shape
    D = params["emb"].shape[1]
    x = params["emb"][tokens] + params["pos"][:, :L, :]              # embedding gather (glue)
    # dropout -> identity
    for lp in params["layers"]:
        x = decoder_block(x, encoder_output, src_mask, trg_mask, lp, head)
    vocab = params["fc_b"].shape[0]
    logits = linear(x.reshape(B * L, D), params["fc_w"], params["fc_b"])
    return logits.reshape(B, L, vocab)


# ----------------------------------------------------------------------------
# Deterministic parameter initialization (weights stored bf16, biases f32)
# ----------------------------------------------------------------------------

def _init_linear(key, din, dout):
    k1, k2 = jax.random.split(key)
    bound = 1.0 / math.sqrt(din)
    w = jax.random.uniform(k1, (din, dout), jnp.float32, -bound, bound).astype(jnp.bfloat16)
    b = jax.random.uniform(k2, (dout,), jnp.float32, -bound, bound)
    return w, b


def _init_mha_self(key, d_model):
    ks = jax.random.split(key, 4)
    wq, bq = _init_linear(ks[0], d_model, d_model)
    wk, bk = _init_linear(ks[1], d_model, d_model)
    wv, bv = _init_linear(ks[2], d_model, d_model)
    wo, bo = _init_linear(ks[3], d_model, d_model)
    return dict(wqkv=jnp.concatenate([wq, wk, wv], axis=1),
                bqkv=jnp.concatenate([bq, bk, bv]),
                wo=wo, bo=bo)


def _init_mha_cross(key, d_model):
    ks = jax.random.split(key, 4)
    wq, bq = _init_linear(ks[0], d_model, d_model)
    wk, bk = _init_linear(ks[1], d_model, d_model)
    wv, bv = _init_linear(ks[2], d_model, d_model)
    wo, bo = _init_linear(ks[3], d_model, d_model)
    return dict(wq=wq, bq=bq,
                wkv=jnp.concatenate([wk, wv], axis=1),
                bkv=jnp.concatenate([bk, bv]),
                wo=wo, bo=bo)


def init_params(key, vocab_size, d_model, num_layers, forward_expansion, max_len):
    keys = jax.random.split(key, 3 + num_layers)
    params = {
        "emb": jax.random.normal(keys[0], (vocab_size, d_model), jnp.float32),
        "pos": jnp.zeros((1, max_len, d_model), jnp.float32),
    }
    fc_w, fc_b = _init_linear(keys[1], d_model, vocab_size)
    params["fc_w"], params["fc_b"] = fc_w, fc_b

    layers = []
    for li in range(num_layers):
        lk = jax.random.split(keys[3 + li], 4)
        w1, b1 = _init_linear(lk[2], d_model, d_model * forward_expansion)
        w2, b2 = _init_linear(lk[3], d_model * forward_expansion, d_model)
        layers.append({
            "self_attn": _init_mha_self(lk[0], d_model),
            "norm_g": jnp.ones((d_model,), jnp.float32),
            "norm_b": jnp.zeros((d_model,), jnp.float32),
            "tblock": {
                "attn": _init_mha_cross(lk[1], d_model),
                "ln1_g": jnp.ones((d_model,), jnp.float32),
                "ln1_b": jnp.zeros((d_model,), jnp.float32),
                "ln2_g": jnp.ones((d_model,), jnp.float32),
                "ln2_b": jnp.zeros((d_model,), jnp.float32),
                "w1": w1, "b1": b1, "w2": w2, "b2": b2,
            },
        })
    params["layers"] = layers
    return params


# ----------------------------------------------------------------------------
# Demo
# ----------------------------------------------------------------------------

if __name__ == "__main__":
    vocab_size = 50
    d_model = 32
    num_layers = 2
    head = 4
    forward_expansion = 2
    max_len = 16

    batch = 2
    tgt_len = 8
    src_len = 8

    root = jax.random.PRNGKey(0)
    k_params, k_tok, k_enc = jax.random.split(root, 3)

    params = init_params(k_params, vocab_size, d_model, num_layers,
                         forward_expansion, max_len)

    tokens = jax.random.randint(k_tok, (batch, tgt_len), 0, vocab_size)
    encoder_output = jax.random.normal(k_enc, (batch, src_len, d_model), jnp.float32)

    # trg_mask: causal (batch, 1, tgt_len, tgt_len); src_mask: all-ones (batch, 1, 1, src_len)
    trg_mask = jnp.broadcast_to(
        jnp.tril(jnp.ones((tgt_len, tgt_len), jnp.float32))[None, None],
        (batch, 1, tgt_len, tgt_len))
    src_mask = jnp.ones((batch, 1, 1, src_len), jnp.float32)

    fwd = jax.jit(decoder_forward, static_argnums=(5,))
    logits = fwd(tokens, encoder_output, src_mask, trg_mask, params, head)
    logits = jax.block_until_ready(logits)

    assert logits.shape == (batch, tgt_len, vocab_size)
    assert bool(jnp.all(jnp.isfinite(logits)))
    print("KERNEL_OK")
</pallas_src>

<mosaic_0001>
module attributes {stable_mosaic.version = 11 : i64} {
  func.func @_linear_kernel(%arg0: i32, %arg1: i32, %arg2: i32, %arg3: memref<16x32xf32, #tpu.memory_space<vmem>>, %arg4: memref<32x128xbf16, #tpu.memory_space<vmem>>, %arg5: memref<1x128xf32, #tpu.memory_space<vmem>>, %arg6: memref<16x128xf32, #tpu.memory_space<vmem>>, %arg7: memref<16x128xf32, #tpu.memory_space<vmem>>) attributes {dimension_semantics = [#tpu.dimension_semantics<parallel>, #tpu.dimension_semantics<parallel>, #tpu.dimension_semantics<arbitrary>], iteration_bounds = array<i64: 1, 1, 1>, scalar_prefetch = 0 : i64, scratch_operands = 1 : i64, tpu.core_type = #tpu.core_type<tc>, window_params = [{transform_indices = @transform_0, window_bounds = array<i64: 16, 32>}, {transform_indices = @transform_1, window_bounds = array<i64: 32, 128>}, {transform_indices = @transform_2, window_bounds = array<i64: 1, 128>}, {transform_indices = @transform_3, window_bounds = array<i64: 16, 128>}]} {
    %c0_i32 = arith.constant 0 : i32
    %0 = arith.cmpi eq, %arg2, %c0_i32 : i32
    %1 = arith.extui %0 : i1 to i32
    %c0_i32_0 = arith.constant 0 : i32
    %2 = arith.cmpi ne, %1, %c0_i32_0 : i32
    scf.if %2 {
      %cst_10 = arith.constant 0.000000e+00 : f32
      %13 = vector.broadcast %cst_10 : f32 to vector<16x128xf32>
      %c0_11 = arith.constant 0 : index
      %c0_12 = arith.constant 0 : index
      %14 = vector.load %arg7[%c0_11, %c0_12] : memref<16x128xf32, #tpu.memory_space<vmem>>, vector<16x128xf32>
      tpu.vector_store %arg7[%c0_11, %c0_12], %13 {strides = array<i32>} : memref<16x128xf32, #tpu.memory_space<vmem>>, vector<16x128xf32>,
    } else {
    }
    %c0 = arith.constant 0 : index
    %c0_1 = arith.constant 0 : index
    %3 = vector.load %arg7[%c0, %c0_1] : memref<16x128xf32, #tpu.memory_space<vmem>>, vector<16x128xf32>
    %c0_2 = arith.constant 0 : index
    %c0_3 = arith.constant 0 : index
    %4 = vector.load %arg3[%c0_2, %c0_3] : memref<16x32xf32, #tpu.memory_space<vmem>>, vector<16x32xf32>
    %5 = arith.truncf %4 : vector<16x32xf32> to vector<16x32xbf16>
    %c0_4 = arith.constant 0 : index
    %c0_5 = arith.constant 0 : index
    %6 = vector.load %arg4[%c0_4, %c0_5] : memref<32x128xbf16, #tpu.memory_space<vmem>>, vector<32x128xbf16>
    %cst = arith.constant dense<0.000000e+00> : vector<16x128xf32>
    %7 = tpu.matmul %5, %6, %cst {dimension_numbers = #tpu.dot_dimension_numbers<[1], [0], [0], [1], [0, 0, 1, 1], [], []>} : vector<16x32xbf16>, vector<32x128xbf16>, vector<16x128xf32> -> vector<16x128xf32>
    %8 = arith.addf %3, %7 : vector<16x128xf32>
    %c0_6 = arith.constant 0 : index
    %c0_7 = arith.constant 0 : index
    %9 = vector.load %arg7[%c0_6, %c0_7] : memref<16x128xf32, #tpu.memory_space<vmem>>, vector<16x128xf32>
    tpu.vector_store %arg7[%c0_6, %c0_7], %8 {strides = array<i32>} : memref<16x128xf32, #tpu.memory_space<vmem>>, vector<16x128xf32>,
    %c0_i32_8 = arith.constant 0 : i32
    %10 = arith.cmpi eq, %arg2, %c0_i32_8 : i32
    %11 = arith.extui %10 : i1 to i32
    %c0_i32_9 = arith.constant 0 : i32
    %12 = arith.cmpi ne, %11, %c0_i32_9 : i32
    scf.if %12 {
      %c0_10 = arith.constant 0 : index
      %c0_11 = arith.constant 0 : index
      %13 = vector.load %arg7[%c0_10, %c0_11] : memref<16x128xf32, #tpu.memory_space<vmem>>, vector<16x128xf32>
      %c0_12 = arith.constant 0 : index
      %c0_13 = arith.constant 0 : index
      %14 = vector.load %arg5[%c0_12, %c0_13] : memref<1x128xf32, #tpu.memory_space<vmem>>, vector<1x128xf32>
      %15 = vector.broadcast %14 : vector<1x128xf32> to vector<16x128xf32>
      %16 = arith.addf %13, %15 : vector<16x128xf32>
      %c0_14 = arith.constant 0 : index
      %c0_15 = arith.constant 0 : index
      %17 = vector.load %arg6[%c0_14, %c0_15] : memref<16x128xf32, #tpu.memory_space<vmem>>, vector<16x128xf32>
      tpu.vector_store %arg6[%c0_14, %c0_15], %16 {strides = array<i32>} : memref<16x128xf32, #tpu.memory_space<vmem>>, vector<16x128xf32>,
    } else {
    }
    return
  }
  func.func @transform_0(%arg0: i32, %arg1: i32, %arg2: i32) -> (i32, i32) {
    %c0_i32 = arith.constant 0 : i32
    return %arg0, %arg2 : i32, i32
  }
  func.func @transform_1(%arg0: i32, %arg1: i32, %arg2: i32) -> (i32, i32) {
    %c0_i32 = arith.constant 0 : i32
    return %arg2, %arg1 : i32, i32
  }
  func.func @transform_2(%arg0: i32, %arg1: i32, %arg2: i32) -> (i32, i32) {
    %c0_i32 = arith.constant 0 : i32
    %c0_i32_0 = arith.constant 0 : i32
    return %c0_i32, %arg1 : i32, i32
  }
  func.func @transform_3(%arg0: i32, %arg1: i32, %arg2: i32) -> (i32, i32) {
    %c0_i32 = arith.constant 0 : i32
    return %arg0, %arg1 : i32, i32
  }
}

module attributes {stable_mosaic.version = 11 : i64} {
  func.func @_linear_kernel(%arg0: i32, %arg1: i32, %arg2: i32, %arg3: memref<16x32xf32, #tpu.memory_space<vmem>>, %arg4: memref<32x128xbf16, #tpu.memory_space<vmem>>, %arg5: memref<1x128xf32, #tpu.memory_space<vmem>>, %arg6: memref<16x128xf32, #tpu.memory_space<vmem>>, %arg7: memref<16x128xf32, #tpu.memory_space<vmem>>) attributes {dimension_semantics = [#tpu.dimension_semantics<parallel>, #tpu.dimension_semantics<parallel>, #tpu.dimension_semantics<arbitrary>], iteration_bounds = array<i64: 1, 1, 1>, scalar_prefetch = 0 : i64, scratch_operands = 1 : i64, tpu.core_type = #tpu.core_type<tc>, window_params = [{transform_indices = @transform_0, window_bounds = array<i64: 16, 32>}, {transform_indices = @transform_1, window_bounds = array<i64: 32, 128>}, {transform_indices = @transform_2, window_bounds = array<i64: 1, 128>}, {transform_indices = @transform_3, window_bounds = array<i64: 16, 128>}]} {
    %c0_i32 = arith.constant 0 : i32
    %0 = arith.cmpi eq, %arg2, %c0_i32 : i32
    %1 = arith.extui %0 : i1 to i32
    %c0_i32_0 = arith.constant 0 : i32
    %2 = arith.cmpi ne, %1, %c0_i32_0 : i32
    scf.if %2 {
      %cst_10 = arith.constant 0.000000e+00 : f32
      %13 = vector.broadcast %cst_10 : f32 to vector<16x128xf32>
      %c0_11 = arith.constant 0 : index
      %c0_12 = arith.constant 0 : index
      %14 = vector.load %arg7[%c0_11, %c0_12] : memref<16x128xf32, #tpu.memory_space<vmem>>, vector<16x128xf32>
      tpu.vector_store %arg7[%c0_11, %c0_12], %13 {strides = array<i32>} : memref<16x128xf32, #tpu.memory_space<vmem>>, vector<16x128xf32>,
    } else {
    }
    %c0 = arith.constant 0 : index
    %c0_1 = arith.constant 0 : index
    %3 = vector.load %arg7[%c0, %c0_1] : memref<16x128xf32, #tpu.memory_space<vmem>>, vector<16x128xf32>
    %c0_2 = arith.constant 0 : index
    %c0_3 = arith.constant 0 : index
    %4 = vector.load %arg3[%c0_2, %c0_3] : memref<16x32xf32, #tpu.memory_space<vmem>>, vector<16x32xf32>
    %5 = arith.truncf %4 : vector<16x32xf32> to vector<16x32xbf16>
    %c0_4 = arith.constant 0 : index
    %c0_5 = arith.constant 0 : index
    %6 = vector.load %arg4[%c0_4, %c0_5] : memref<32x128xbf16, #tpu.memory_space<vmem>>, vector<32x128xbf16>
    %cst = arith.constant dense<0.000000e+00> : vector<16x128xf32>
    %7 = tpu.matmul %5, %6, %cst {dimension_numbers = #tpu.dot_dimension_numbers<[1], [0], [0], [1], [0, 0, 1, 1], [], []>} : vector<16x32xbf16>, vector<32x128xbf16>, vector<16x128xf32> -> vector<16x128xf32>
    %8 = arith.addf %3, %7 : vector<16x128xf32>
    %c0_6 = arith.constant 0 : index
    %c0_7 = arith.constant 0 : index
    %9 = vector.load %arg7[%c0_6, %c0_7] : memref<16x128xf32, #tpu.memory_space<vmem>>, vector<16x128xf32>
    tpu.vector_store %arg7[%c0_6, %c0_7], %8 {strides = array<i32>} : memref<16x128xf32, #tpu.memory_space<vmem>>, vector<16x128xf32>,
    %c0_i32_8 = arith.constant 0 : i32
    %10 = arith.cmpi eq, %arg2, %c0_i32_8 : i32
    %11 = arith.extui %10 : i1 to i32
    %c0_i32_9 = arith.constant 0 : i32
    %12 = arith.cmpi ne, %11, %c0_i32_9 : i32
    scf.if %12 {
      %c0_10 = arith.constant 0 : index
      %c0_11 = arith.constant 0 : index
      %13 = vector.load %arg7[%c0_10, %c0_11] : memref<16x128xf32, #tpu.memory_space<vmem>>, vector<16x128xf32>
      %c0_12 = arith.constant 0 : index
      %c0_13 = arith.constant 0 : index
      %14 = vector.load %arg5[%c0_12, %c0_13] : memref<1x128xf32, #tpu.memory_space<vmem>>, vector<1x128xf32>
      %15 = vector.broadcast %14 : vector<1x128xf32> to vector<16x128xf32>
      %16 = arith.addf %13, %15 : vector<16x128xf32>
      %cst_14 = arith.constant 0.000000e+00 : f32
      %17 = vector.broadcast %cst_14 : f32 to vector<16x128xf32>
      %18 = arith.maximumf %16, %17 : vector<16x128xf32>
      %c0_15 = arith.constant 0 : index
      %c0_16 = arith.constant 0 : index
      %19 = vector.load %arg6[%c0_15, %c0_16] : memref<16x128xf32, #tpu.memory_space<vmem>>, vector<16x128xf32>
      tpu.vector_store %arg6[%c0_15, %c0_16], %18 {strides = array<i32>} : memref<16x128xf32, #tpu.memory_space<vmem>>, vector<16x128xf32>,
    } else {
    }
    return
  }
  func.func @transform_0(%arg0: i32, %arg1: i32, %arg2: i32) -> (i32, i32) {
    %c0_i32 = arith.constant 0 : i32
    return %arg0, %arg2 : i32, i32
  }
  func.func @transform_1(%arg0: i32, %arg1: i32, %arg2: i32) -> (i32, i32) {
    %c0_i32 = arith.constant 0 : i32
    return %arg2, %arg1 : i32, i32
  }
  func.func @transform_2(%arg0: i32, %arg1: i32, %arg2: i32) -> (i32, i32) {
    %c0_i32 = arith.constant 0 : i32
    %c0_i32_0 = arith.constant 0 : i32
    return %c0_i32, %arg1 : i32, i32
  }
  func.func @transform_3(%arg0: i32, %arg1: i32, %arg2: i32) -> (i32, i32) {
    %c0_i32 = arith.constant 0 : i32
    return %arg0, %arg1 : i32, i32
  }
}

module attributes {stable_mosaic.version = 11 : i64} {
  func.func @_ln_res_kernel(%arg0: i32, %arg1: memref<16x32xf32, #tpu.memory_space<vmem>>, %arg2: memref<16x32xf32, #tpu.memory_space<vmem>>, %arg3: memref<1x32xf32, #tpu.memory_space<vmem>>, %arg4: memref<1x32xf32, #tpu.memory_space<vmem>>, %arg5: memref<16x32xf32, #tpu.memory_space<vmem>>) attributes {dimension_semantics = [#tpu.dimension_semantics<parallel>], iteration_bounds = array<i64: 1>, scalar_prefetch = 0 : i64, scratch_operands = 0 : i64, tpu.core_type = #tpu.core_type<tc>, window_params = [{transform_indices = @transform_0, window_bounds = array<i64: 16, 32>}, {transform_indices = @transform_1, window_bounds = array<i64: 16, 32>}, {pipeline_mode = #tpu.pipeline_mode<synchronous>, transform_indices = @transform_2, window_bounds = array<i64: 1, 32>}, {pipeline_mode = #tpu.pipeline_mode<synchronous>, transform_indices = @transform_3, window_bounds = array<i64: 1, 32>}, {transform_indices = @transform_4, window_bounds = array<i64: 16, 32>}]} {
    %c0 = arith.constant 0 : index
    %c0_0 = arith.constant 0 : index
    %0 = vector.load %arg1[%c0, %c0_0] : memref<16x32xf32, #tpu.memory_space<vmem>>, vector<16x32xf32>
    %c0_1 = arith.constant 0 : index
    %c0_2 = arith.constant 0 : index
    %1 = vector.load %arg2[%c0_1, %c0_2] : memref<16x32xf32, #tpu.memory_space<vmem>>, vector<16x32xf32>
    %2 = arith.addf %0, %1 : vector<16x32xf32>
    %cst = arith.constant dense<0.000000e+00> : vector<16xf32>
    %3 = vector.multi_reduction <add>, %2, %cst [1] : vector<16x32xf32> to vector<16xf32>
    %4 = vector.shape_cast %3 : vector<16xf32> to vector<16x1xf32>
    %cst_3 = arith.constant 3.200000e+01 : f32
    %5 = vector.broadcast %cst_3 : f32 to vector<16x1xf32>
    %6 = arith.divf %4, %5 : vector<16x1xf32>
    %7 = vector.broadcast %6 : vector<16x1xf32> to vector<16x32xf32>
    %8 = arith.subf %2, %7 : vector<16x32xf32>
    %9 = arith.mulf %8, %8 : vector<16x32xf32>
    %cst_4 = arith.constant dense<0.000000e+00> : vector<16xf32>
    %10 = vector.multi_reduction <add>, %9, %cst_4 [1] : vector<16x32xf32> to vector<16xf32>
    %11 = vector.shape_cast %10 : vector<16xf32> to vector<16x1xf32>
    %cst_5 = arith.constant 3.200000e+01 : f32
    %12 = vector.broadcast %cst_5 : f32 to vector<16x1xf32>
    %13 = arith.divf %11, %12 : vector<16x1xf32>
    %14 = vector.broadcast %6 : vector<16x1xf32> to vector<16x32xf32>
    %15 = arith.subf %2, %14 : vector<16x32xf32>
    %cst_6 = arith.constant 9.99999974E-6 : f32
    %16 = vector.broadcast %cst_6 : f32 to vector<16x1xf32>
    %17 = arith.addf %13, %16 : vector<16x1xf32>
    %18 = math.rsqrt %17 : vector<16x1xf32>
    %19 = vector.broadcast %18 : vector<16x1xf32> to vector<16x32xf32>
    %20 = arith.mulf %15, %19 : vector<16x32xf32>
    %c0_7 = arith.constant 0 : index
    %c0_8 = arith.constant 0 : index
    %21 = vector.load %arg3[%c0_7, %c0_8] : memref<1x32xf32, #tpu.memory_space<vmem>>, vector<1x32xf32>
    %22 = vector.broadcast %21 : vector<1x32xf32> to vector<16x32xf32>
    %23 = arith.mulf %20, %22 : vector<16x32xf32>
    %c0_9 = arith.constant 0 : index
    %c0_10 = arith.constant 0 : index
    %24 = vector.load %arg4[%c0_9, %c0_10] : memref<1x32xf32, #tpu.memory_space<vmem>>, vector<1x32xf32>
    %25 = vector.broadcast %24 : vector<1x32xf32> to vector<16x32xf32>
    %26 = arith.addf %23, %25 : vector<16x32xf32>
    %c0_11 = arith.constant 0 : index
    %c0_12 = arith.constant 0 : index
    %27 = vector.load %arg5[%c0_11, %c0_12] : memref<16x32xf32, #tpu.memory_space<vmem>>, vector<16x32xf32>
    tpu.vector_store %arg5[%c0_11, %c0_12], %26 {strides = array<i32>} : memref<16x32xf32, #tpu.memory_space<vmem>>, vector<16x32xf32>,
    return
  }
  func.func @transform_0(%arg0: i32) -> (i32, i32) {
    %c0_i32 = arith.constant 0 : i32
    %c0_i32_0 = arith.constant 0 : i32
    return %arg0, %c0_i32 : i32, i32
  }
  func.func @transform_1(%arg0: i32) -> (i32, i32) {
    %c0_i32 = arith.constant 0 : i32
    %c0_i32_0 = arith.constant 0 : i32
    return %arg0, %c0_i32 : i32, i32
  }
  func.func @transform_2(%arg0: i32) -> (i32, i32) {
    %c0_i32 = arith.constant 0 : i32
    %c0_i32_0 = arith.constant 0 : i32
    %c0_i32_1 = arith.constant 0 : i32
    return %c0_i32, %c0_i32_0 : i32, i32
  }
  func.func @transform_3(%arg0: i32) -> (i32, i32) {
    %c0_i32 = arith.constant 0 : i32
    %c0_i32_0 = arith.constant 0 : i32
    %c0_i32_1 = arith.constant 0 : i32
    return %c0_i32, %c0_i32_0 : i32, i32
  }
  func.func @transform_4(%arg0: i32) -> (i32, i32) {
    %c0_i32 = arith.constant 0 : i32
    %c0_i32_0 = arith.constant 0 : i32
    return %arg0, %c0_i32 : i32, i32
  }
}

module attributes {stable_mosaic.version = 11 : i64} {
  func.func @_attn_kernel(%arg0: i32, %arg1: memref<1x8x32xf32, #tpu.memory_space<vmem>>, %arg2: memref<1x8x32xf32, #tpu.memory_space<vmem>>, %arg3: memref<1x8x32xf32, #tpu.memory_space<vmem>>, %arg4: memref<1x8x8xf32, #tpu.memory_space<vmem>>, %arg5: memref<1x8x32xf32, #tpu.memory_space<vmem>>) attributes {dimension_semantics = [#tpu.dimension_semantics<parallel>], iteration_bounds = array<i64: 2>, scalar_prefetch = 0 : i64, scratch_operands = 0 : i64, tpu.core_type = #tpu.core_type<tc>, window_params = [{transform_indices = @transform_0, window_bounds = array<i64: 1, 8, 32>}, {transform_indices = @transform_1, window_bounds = array<i64: 1, 8, 32>}, {transform_indices = @transform_2, window_bounds = array<i64: 1, 8, 32>}, {transform_indices = @transform_3, window_bounds = array<i64: 1, 8, 8>}, {transform_indices = @transform_4, window_bounds = array<i64: 1, 8, 32>}]} {
    %c0 = arith.constant 0 : index
    %c0_0 = arith.constant 0 : index
    %c0_1 = arith.constant 0 : index
    %0 = vector.load %arg1[%c0, %c0_0, %c0_1] : memref<1x8x32xf32, #tpu.memory_space<vmem>>, vector<1x8x32xf32>
    %1 = vector.shape_cast %0 : vector<1x8x32xf32> to vector<8x32xf32>
    %2 = arith.truncf %1 : vector<8x32xf32> to vector<8x32xbf16>
    %c0_2 = arith.constant 0 : index
    %c0_3 = arith.constant 0 : index
    %c0_4 = arith.constant 0 : index
    %3 = vector.load %arg2[%c0_2, %c0_3, %c0_4] : memref<1x8x32xf32, #tpu.memory_space<vmem>>, vector<1x8x32xf32>
    %4 = vector.shape_cast %3 : vector<1x8x32xf32> to vector<8x32xf32>
    %5 = arith.truncf %4 : vector<8x32xf32> to vector<8x32xbf16>
    %c0_5 = arith.constant 0 : index
    %c0_6 = arith.constant 0 : index
    %c0_7 = arith.constant 0 : index
    %6 = vector.load %arg3[%c0_5, %c0_6, %c0_7] : memref<1x8x32xf32, #tpu.memory_space<vmem>>, vector<1x8x32xf32>
    %7 = vector.shape_cast %6 : vector<1x8x32xf32> to vector<8x32xf32>
    %8 = arith.truncf %7 : vector<8x32xf32> to vector<8x32xbf16>
    %c0_8 = arith.constant 0 : index
    %c0_9 = arith.constant 0 : index
    %c0_10 = arith.constant 0 : index
    %9 = vector.load %arg4[%c0_8, %c0_9, %c0_10] : memref<1x8x8xf32, #tpu.memory_space<vmem>>, vector<1x8x8xf32>
    %10 = vector.shape_cast %9 : vector<1x8x8xf32> to vector<8x8xf32>
    %11 = vector.extract_strided_slice %2 {offsets = [0, 0], sizes = [8, 8], strides = [1, 1]} : vector<8x32xbf16> to vector<8x8xbf16>
    %12 = vector.extract_strided_slice %5 {offsets = [0, 0], sizes = [8, 8], strides = [1, 1]} : vector<8x32xbf16> to vector<8x8xbf16>
    %13 = vector.extract_strided_slice %8 {offsets = [0, 0], sizes = [8, 8], strides = [1, 1]} : vector<8x32xbf16> to vector<8x8xbf16>
    %cst = arith.constant dense<0.000000e+00> : vector<8x8xf32>
    %14 = tpu.matmul %11, %12, %cst {dimension_numbers = #tpu.dot_dimension_numbers<[1], [1], [0], [0], [0, 0, 1, 0], [], []>} : vector<8x8xbf16>, vector<8x8xbf16>, vector<8x8xf32> -> vector<8x8xf32>
    %cst_11 = arith.constant 0.353553385 : f32
    %15 = vector.broadcast %cst_11 : f32 to vector<8x8xf32>
    %16 = arith.mulf %14, %15 : vector<8x8xf32>
    %cst_12 = arith.constant 0.000000e+00 : f32
    %17 = vector.broadcast %cst_12 : f32 to vector<8x8xf32>
    %18 = arith.cmpf oeq, %10, %17 : vector<8x8xf32>
    %cst_13 = arith.constant -1.000000e+09 : f32
    %19 = vector.broadcast %cst_13 : f32 to vector<8x8xf32>
    %20 = arith.select %18, %19, %16 : vector<8x8xi1>, vector<8x8xf32>
    %cst_14 = arith.constant dense<0xFF800000> : vector<8xf32>
    %21 = vector.multi_reduction <maximumf>, %20, %cst_14 [1] : vector<8x8xf32> to vector<8xf32>
    %22 = vector.shape_cast %21 : vector<8xf32> to vector<8x1xf32>
    %23 = vector.broadcast %22 : vector<8x1xf32> to vector<8x8xf32>
    %24 = arith.subf %20, %23 : vector<8x8xf32>
    %25 = math.exp %24 : vector<8x8xf32>
    %cst_15 = arith.constant dense<0.000000e+00> : vector<8xf32>
    %26 = vector.multi_reduction <add>, %25, %cst_15 [1] : vector<8x8xf32> to vector<8xf32>
    %27 = vector.shape_cast %26 : vector<8xf32> to vector<8x1xf32>
    %28 = tpu.reciprocal %27 {approx = true} : vector<8x1xf32> -> vector<8x1xf32>
    %29 = vector.broadcast %28 : vector<8x1xf32> to vector<8x8xf32>
    %30 = arith.mulf %25, %29 : vector<8x8xf32>
    %31 = arith.truncf %30 : vector<8x8xf32> to vector<8x8xbf16>
    %cst_16 = arith.constant dense<0.000000e+00> : vector<8x8xf32>
    %32 = tpu.matmul %31, %13, %cst_16 {dimension_numbers = #tpu.dot_dimension_numbers<[1], [0], [0], [1], [0, 0, 1, 1], [], []>} : vector<8x8xbf16>, vector<8x8xbf16>, vector<8x8xf32> -> vector<8x8xf32>
    %33 = vector.extract_strided_slice %2 {offsets = [0, 8], sizes = [8, 8], strides = [1, 1]} : vector<8x32xbf16> to vector<8x8xbf16>
    %34 = vector.extract_strided_slice %5 {offsets = [0, 8], sizes = [8, 8], strides = [1, 1]} : vector<8x32xbf16> to vector<8x8xbf16>
    %35 = vector.extract_strided_slice %8 {offsets = [0, 8], sizes = [8, 8], strides = [1, 1]} : vector<8x32xbf16> to vector<8x8xbf16>
    %cst_17 = arith.constant dense<0.000000e+00> : vector<8x8xf32>
    %36 = tpu.matmul %33, %34, %cst_17 {dimension_numbers = #tpu.dot_dimension_numbers<[1], [1], [0], [0], [0, 0, 1, 0], [], []>} : vector<8x8xbf16>, vector<8x8xbf16>, vector<8x8xf32> -> vector<8x8xf32>
    %cst_18 = arith.constant 0.353553385 : f32
    %37 = vector.broadcast %cst_18 : f32 to vector<8x8xf32>
    %38 = arith.mulf %36, %37 : vector<8x8xf32>
    %cst_19 = arith.constant 0.000000e+00 : f32
    %39 = vector.broadcast %cst_19 : f32 to vector<8x8xf32>
    %40 = arith.cmpf oeq, %10, %39 : vector<8x8xf32>
    %cst_20 = arith.constant -1.000000e+09 : f32
    %41 = vector.broadcast %cst_20 : f32 to vector<8x8xf32>
    %42 = arith.select %40, %41, %38 : vector<8x8xi1>, vector<8x8xf32>
    %cst_21 = arith.constant dense<0xFF800000> : vector<8xf32>
    %43 = vector.multi_reduction <maximumf>, %42, %cst_21 [1] : vector<8x8xf32> to vector<8xf32>
    %44 = vector.shape_cast %43 : vector<8xf32> to vector<8x1xf32>
    %45 = vector.broadcast %44 : vector<8x1xf32> to vector<8x8xf32>
    %46 = arith.subf %42, %45 : vector<8x8xf32>
    %47 = math.exp %46 : vector<8x8xf32>
    %cst_22 = arith.constant dense<0.000000e+00> : vector<8xf32>
    %48 = vector.multi_reduction <add>, %47, %cst_22 [1] : vector<8x8xf32> to vector<8xf32>
    %49 = vector.shape_cast %48 : vector<8xf32> to vector<8x1xf32>
    %50 = tpu.reciprocal %49 {approx = true} : vector<8x1xf32> -> vector<8x1xf32>
    %51 = vector.broadcast %50 : vector<8x1xf32> to vector<8x8xf32>
    %52 = arith.mulf %47, %51 : vector<8x8xf32>
    %53 = arith.truncf %52 : vector<8x8xf32> to vector<8x8xbf16>
    %cst_23 = arith.constant dense<0.000000e+00> : vector<8x8xf32>
    %54 = tpu.matmul %53, %35, %cst_23 {dimension_numbers = #tpu.dot_dimension_numbers<[1], [0], [0], [1], [0, 0, 1, 1], [], []>} : vector<8x8xbf16>, vector<8x8xbf16>, vector<8x8xf32> -> vector<8x8xf32>
    %55 = vector.extract_strided_slice %2 {offsets = [0, 16], sizes = [8, 8], strides = [1, 1]} : vector<8x32xbf16> to vector<8x8xbf16>
    %56 = vector.extract_strided_slice %5 {offsets = [0, 16], sizes = [8, 8], strides = [1, 1]} : vector<8x32xbf16> to vector<8x8xbf16>
    %57 = vector.extract_strided_slice %8 {offsets = [0, 16], sizes = [8, 8], strides = [1, 1]} : vector<8x32xbf16> to vector<8x8xbf16>
    %cst_24 = arith.constant dense<0.000000e+00> : vector<8x8xf32>
    %58 = tpu.matmul %55, %56, %cst_24 {dimension_numbers = #tpu.dot_dimension_numbers<[1], [1], [0], [0], [0, 0, 1, 0], [], []>} : vector<8x8xbf16>, vector<8x8xbf16>, vector<8x8xf32> -> vector<8x8xf32>
    %cst_25 = arith.constant 0.353553385 : f32
    %59 = vector.broadcast %cst_25 : f32 to vector<8x8xf32>
    %60 = arith.mulf %58, %59 : vector<8x8xf32>
    %cst_26 = arith.constant 0.000000e+00 : f32
    %61 = vector.broadcast %cst_26 : f32 to vector<8x8xf32>
    %62 = arith.cmpf oeq, %10, %61 : vector<8x8xf32>
    %cst_27 = arith.constant -1.000000e+09 : f32
    %63 = vector.broadcast %cst_27 : f32 to vector<8x8xf32>
    %64 = arith.select %62, %63, %60 : vector<8x8xi1>, vector<8x8xf32>
    %cst_28 = arith.constant dense<0xFF800000> : vector<8xf32>
    %65 = vector.multi_reduction <maximumf>, %64, %cst_28 [1] : vector<8x8xf32> to vector<8xf32>
    %66 = vector.shape_cast %65 : vector<8xf32> to vector<8x1xf32>
    %67 = vector.broadcast %66 : vector<8x1xf32> to vector<8x8xf32>
    %68 = arith.subf %64, %67 : vector<8x8xf32>
    %69 = math.exp %68 : vector<8x8xf32>
    %cst_29 = arith.constant dense<0.000000e+00> : vector<8xf32>
    %70 = vector.multi_reduction <add>, %69, %cst_29 [1] : vector<8x8xf32> to vector<8xf32>
    %71 = vector.shape_cast %70 : vector<8xf32> to vector<8x1xf32>
    %72 = tpu.reciprocal %71 {approx = true} : vector<8x1xf32> -> vector<8x1xf32>
    %73 = vector.broadcast %72 : vector<8x1xf32> to vector<8x8xf32>
    %74 = arith.mulf %69, %73 : vector<8x8xf32>
    %75 = arith.truncf %74 : vector<8x8xf32> to vector<8x8xbf16>
    %cst_30 = arith.constant dense<0.000000e+00> : vector<8x8xf32>
    %76 = tpu.matmul %75, %57, %cst_30 {dimension_numbers = #tpu.dot_dimension_numbers<[1], [0], [0], [1], [0, 0, 1, 1], [], []>} : vector<8x8xbf16>, vector<8x8xbf16>, vector<8x8xf32> -> vector<8x8xf32>
    %77 = vector.extract_strided_slice %2 {offsets = [0, 24], sizes = [8, 8], strides = [1, 1]} : vector<8x32xbf16> to vector<8x8xbf16>
    %78 = vector.extract_strided_slice %5 {offsets = [0, 24], sizes = [8, 8], strides = [1, 1]} : vector<8x32xbf16> to vector<8x8xbf16>
    %79 = vector.extract_strided_slice %8 {offsets = [0, 24], sizes = [8, 8], strides = [1, 1]} : vector<8x32xbf16> to vector<8x8xbf16>
    %cst_31 = arith.constant dense<0.000000e+00> : vector<8x8xf32>
    %80 = tpu.matmul %77, %78, %cst_31 {dimension_numbers = #tpu.dot_dimension_numbers<[1], [1], [0], [0], [0, 0, 1, 0], [], []>} : vector<8x8xbf16>, vector<8x8xbf16>, vector<8x8xf32> -> vector<8x8xf32>
    %cst_32 = arith.constant 0.353553385 : f32
    %81 = vector.broadcast %cst_32 : f32 to vector<8x8xf32>
    %82 = arith.mulf %80, %81 : vector<8x8xf32>
    %cst_33 = arith.constant 0.000000e+00 : f32
    %83 = vector.broadcast %cst_33 : f32 to vector<8x8xf32>
    %84 = arith.cmpf oeq, %10, %83 : vector<8x8xf32>
    %cst_34 = arith.constant -1.000000e+09 : f32
    %85 = vector.broadcast %cst_34 : f32 to vector<8x8xf32>
    %86 = arith.select %84, %85, %82 : vector<8x8xi1>, vector<8x8xf32>
    %cst_35 = arith.constant dense<0xFF800000> : vector<8xf32>
    %87 = vector.multi_reduction <maximumf>, %86, %cst_35 [1] : vector<8x8xf32> to vector<8xf32>
    %88 = vector.shape_cast %87 : vector<8xf32> to vector<8x1xf32>
    %89 = vector.broadcast %88 : vector<8x1xf32> to vector<8x8xf32>
    %90 = arith.subf %86, %89 : vector<8x8xf32>
    %91 = math.exp %90 : vector<8x8xf32>
    %cst_36 = arith.constant dense<0.000000e+00> : vector<8xf32>
    %92 = vector.multi_reduction <add>, %91, %cst_36 [1] : vector<8x8xf32> to vector<8xf32>
    %93 = vector.shape_cast %92 : vector<8xf32> to vector<8x1xf32>
    %94 = tpu.reciprocal %93 {approx = true} : vector<8x1xf32> -> vector<8x1xf32>
    %95 = vector.broadcast %94 : vector<8x1xf32> to vector<8x8xf32>
    %96 = arith.mulf %91, %95 : vector<8x8xf32>
    %97 = arith.truncf %96 : vector<8x8xf32> to vector<8x8xbf16>
    %cst_37 = arith.constant dense<0.000000e+00> : vector<8x8xf32>
    %98 = tpu.matmul %97, %79, %cst_37 {dimension_numbers = #tpu.dot_dimension_numbers<[1], [0], [0], [1], [0, 0, 1, 1], [], []>} : vector<8x8xbf16>, vector<8x8xbf16>, vector<8x8xf32> -> vector<8x8xf32>
    %99 = tpu.concatenate %32, %54, %76, %98 in 1 : vector<8x8xf32>, vector<8x8xf32>, vector<8x8xf32>, vector<8x8xf32> -> vector<8x32xf32>
    %c0_38 = arith.constant 0 : index
    %c0_39 = arith.constant 0 : index
    %c0_40 = arith.constant 0 : index
    %100 = vector.load %arg5[%c0_38, %c0_39, %c0_40] : memref<1x8x32xf32, #tpu.memory_space<vmem>>, vector<1x8x32xf32>
    %101 = vector.shape_cast %100 : vector<1x8x32xf32> to vector<8x32xf32>
    %102 = vector.shape_cast %99 : vector<8x32xf32> to vector<1x8x32xf32>
    tpu.vector_store %arg5[%c0_38, %c0_39, %c0_40], %102 {strides = array<i32>} : memref<1x8x32xf32, #tpu.memory_space<vmem>>, vector<1x8x32xf32>,
    return
  }
  func.func @transform_0(%arg0: i32) -> (i32, i32, i32) {
    %c0_i32 = arith.constant 0 : i32
    %c0_i32_0 = arith.constant 0 : i32
    %c0_i32_1 = arith.constant 0 : i32
    return %arg0, %c0_i32, %c0_i32_0 : i32, i32, i32
  }
  func.func @transform_1(%arg0: i32) -> (i32, i32, i32) {
    %c0_i32 = arith.constant 0 : i32
    %c0_i32_0 = arith.constant 0 : i32
    %c0_i32_1 = arith.constant 0 : i32
    return %arg0, %c0_i32, %c0_i32_0 : i32, i32, i32
  }
  func.func @transform_2(%arg0: i32) -> (i32, i32, i32) {
    %c0_i32 = arith.constant 0 : i32
    %c0_i32_0 = arith.constant 0 : i32
    %c0_i32_1 = arith.constant 0 : i32
    return %arg0, %c0_i32, %c0_i32_0 : i32, i32, i32
  }
  func.func @transform_3(%arg0: i32) -> (i32, i32, i32) {
    %c0_i32 = arith.constant 0 : i32
    %c0_i32_0 = arith.constant 0 : i32
    %c0_i32_1 = arith.constant 0 : i32
    return %arg0, %c0_i32, %c0_i32_0 : i32, i32, i32
  }
  func.func @transform_4(%arg0: i32) -> (i32, i32, i32) {
    %c0_i32 = arith.constant 0 : i32
    %c0_i32_0 = arith.constant 0 : i32
    %c0_i32_1 = arith.constant 0 : i32
    return %arg0, %c0_i32, %c0_i32_0 : i32, i32, i32
  }
}

module attributes {stable_mosaic.version = 11 : i64} {
  func.func @_linear_kernel(%arg0: i32, %arg1: i32, %arg2: i32, %arg3: memref<16x64xf32, #tpu.memory_space<vmem>>, %arg4: memref<64x128xbf16, #tpu.memory_space<vmem>>, %arg5: memref<1x128xf32, #tpu.memory_space<vmem>>, %arg6: memref<16x128xf32, #tpu.memory_space<vmem>>, %arg7: memref<16x128xf32, #tpu.memory_space<vmem>>) attributes {dimension_semantics = [#tpu.dimension_semantics<parallel>, #tpu.dimension_semantics<parallel>, #tpu.dimension_semantics<arbitrary>], iteration_bounds = array<i64: 1, 1, 1>, scalar_prefetch = 0 : i64, scratch_operands = 1 : i64, tpu.core_type = #tpu.core_type<tc>, window_params = [{transform_indices = @transform_0, window_bounds = array<i64: 16, 64>}, {transform_indices = @transform_1, window_bounds = array<i64: 64, 128>}, {transform_indices = @transform_2, window_bounds = array<i64: 1, 128>}, {transform_indices = @transform_3, window_bounds = array<i64: 16, 128>}]} {
    %c0_i32 = arith.constant 0 : i32
    %0 = arith.cmpi eq, %arg2, %c0_i32 : i32
    %1 = arith.extui %0 : i1 to i32
    %c0_i32_0 = arith.constant 0 : i32
    %2 = arith.cmpi ne, %1, %c0_i32_0 : i32
    scf.if %2 {
      %cst_10 = arith.constant 0.000000e+00 : f32
      %13 = vector.broadcast %cst_10 : f32 to vector<16x128xf32>
      %c0_11 = arith.constant 0 : index
      %c0_12 = arith.constant 0 : index
      %14 = vector.load %arg7[%c0_11, %c0_12] : memref<16x128xf32, #tpu.memory_space<vmem>>, vector<16x128xf32>
      tpu.vector_store %arg7[%c0_11, %c0_12], %13 {strides = array<i32>} : memref<16x128xf32, #tpu.memory_space<vmem>>, vector<16x128xf32>,
    } else {
    }
    %c0 = arith.constant 0 : index
    %c0_1 = arith.constant 0 : index
    %3 = vector.load %arg7[%c0, %c0_1] : memref<16x128xf32, #tpu.memory_space<vmem>>, vector<16x128xf32>
    %c0_2 = arith.constant 0 : index
    %c0_3 = arith.constant 0 : index
    %4 = vector.load %arg3[%c0_2, %c0_3] : memref<16x64xf32, #tpu.memory_space<vmem>>, vector<16x64xf32>
    %5 = arith.truncf %4 : vector<16x64xf32> to vector<16x64xbf16>
    %c0_4 = arith.constant 0 : index
    %c0_5 = arith.constant 0 : index
    %6 = vector.load %arg4[%c0_4, %c0_5] : memref<64x128xbf16, #tpu.memory_space<vmem>>, vector<64x128xbf16>
    %cst = arith.constant dense<0.000000e+00> : vector<16x128xf32>
    %7 = tpu.matmul %5, %6, %cst {dimension_numbers = #tpu.dot_dimension_numbers<[1], [0], [0], [1], [0, 0, 1, 1], [], []>} : vector<16x64xbf16>, vector<64x128xbf16>, vector<16x128xf32> -> vector<16x128xf32>
    %8 = arith.addf %3, %7 : vector<16x128xf32>
    %c0_6 = arith.constant 0 : index
    %c0_7 = arith.constant 0 : index
    %9 = vector.load %arg7[%c0_6, %c0_7] : memref<16x128xf32, #tpu.memory_space<vmem>>, vector<16x128xf32>
    tpu.vector_store %arg7[%c0_6, %c0_7], %8 {strides = array<i32>} : memref<16x128xf32, #tpu.memory_space<vmem>>, vector<16x128xf32>,
    %c0_i32_8 = arith.constant 0 : i32
    %10 = arith.cmpi eq, %arg2, %c0_i32_8 : i32
    %11 = arith.extui %10 : i1 to i32
    %c0_i32_9 = arith.constant 0 : i32
    %12 = arith.cmpi ne, %11, %c0_i32_9 : i32
    scf.if %12 {
      %c0_10 = arith.constant 0 : index
      %c0_11 = arith.constant 0 : index
      %13 = vector.load %arg7[%c0_10, %c0_11] : memref<16x128xf32, #tpu.memory_space<vmem>>, vector<16x128xf32>
      %c0_12 = arith.constant 0 : index
      %c0_13 = arith.constant 0 : index
      %14 = vector.load %arg5[%c0_12, %c0_13] : memref<1x128xf32, #tpu.memory_space<vmem>>, vector<1x128xf32>
      %15 = vector.broadcast %14 : vector<1x128xf32> to vector<16x128xf32>
      %16 = arith.addf %13, %15 : vector<16x128xf32>
      %c0_14 = arith.constant 0 : index
      %c0_15 = arith.constant 0 : index
      %17 = vector.load %arg6[%c0_14, %c0_15] : memref<16x128xf32, #tpu.memory_space<vmem>>, vector<16x128xf32>
      tpu.vector_store %arg6[%c0_14, %c0_15], %16 {strides = array<i32>} : memref<16x128xf32, #tpu.memory_space<vmem>>, vector<16x128xf32>,
    } else {
    }
    return
  }
  func.func @transform_0(%arg0: i32, %arg1: i32, %arg2: i32) -> (i32, i32) {
    %c0_i32 = arith.constant 0 : i32
    return %arg0, %arg2 : i32, i32
  }
  func.func @transform_1(%arg0: i32, %arg1: i32, %arg2: i32) -> (i32, i32) {
    %c0_i32 = arith.constant 0 : i32
    return %arg2, %arg1 : i32, i32
  }
  func.func @transform_2(%arg0: i32, %arg1: i32, %arg2: i32) -> (i32, i32) {
    %c0_i32 = arith.constant 0 : i32
    %c0_i32_0 = arith.constant 0 : i32
    return %c0_i32, %arg1 : i32, i32
  }
  func.func @transform_3(%arg0: i32, %arg1: i32, %arg2: i32) -> (i32, i32) {
    %c0_i32 = arith.constant 0 : i32
    return %arg0, %arg1 : i32, i32
  }
}

</mosaic_0001>

<bundles_post_ra>
// kernel: decoder_forward.25
= control target key start
LH: loop header
LB: loop body
LE: loop exit
PB: predicated region body
PF: predicated region fallthrough
CT: control target
= control target key end

     0   :  { %vm42_vm0 = vcmask 261120   ;;  %s134_s1 = inlined_call_operand.vmem [shape: bf16[32,128], index: 1, kind: input, shape index: {}]   ;;  %s135_s0 = inlined_call_operand.vmem [shape: f32[16,32], index: 0, kind: input, shape index: {}]   ;;  %s136_s2 = inlined_call_operand.vmem [shape: f32[1,128], index: 2, kind: input, shape index: {}]   ;;  %s137_s3 = inlined_call_operand.vmem [shape: f32[16,128], index: 3, kind: output, shape index: {}]  }
   0x1   :  { %v91_v0 = vld [vmem:[%s134_s1 + $0x8] sm:$0xff]  ;;  %v90_v1 = vld [vmem:[%s134_s1] sm:$0xff] }
   0x2   :  { %52 = vmatpush.bf16.msra.mxu0 %v91_v0  ;;  %v23_v2 = vld [vmem:[%s135_s0] sm:$0xff]  ;;  %v24_v3 = vld [vmem:[%s135_s0 + $0x8] sm:$0xff] }
   0x3   :  { %v25_v4 = vpack.c.bf16 %v24_v3, %v23_v2  ;;  %v92_v5 = vld [vmem:[%s136_s2] ss:$0 sm:$0xff] }
   0x6   :  { %53 = vmatpush.bf16.msra.mxu0 %v90_v1 }
   0x9   :  { %89 = vmatmul.msk.bf16.vlgmr.msra.gmra.mxu0 %vm42_vm0, %v25_v4 }
  0x86   :  { %v55_v6 = vpop.f32.mrf.mxu0 }
  0x87   :  { %v73_v7 = vadd.f32 %v92_v5, %v55_v6 }
  0x89   :  { %75 = vst [vmem:[%s137_s3] sm:$0xff] %v73_v7 }
  0x8e   :  { %v57_v8 = vpop.f32.mrf.mxu0 }
  0x8f   :  { %v74_v9 = vadd.f32 %v92_v5, %v57_v8 }
  0x91   :  { %76 = vst [vmem:[%s137_s3 + $0x8] sm:$0xff] %v74_v9 }

// kernel: decoder_forward.28
= control target key start
LH: loop header
LB: loop body
LE: loop exit
PB: predicated region body
PF: predicated region fallthrough
CT: control target
= control target key end

     0   :  { %vm23_vm0 = vcmask 261120   ;;  %v102_v8 = vmov 32.0   ;;  %s158_s0 = inlined_call_operand.vmem [shape: f32[16,32], index: 0, kind: input, shape index: {}]   ;;  %s159_s1 = inlined_call_operand.vmem [shape: f32[16,32], index: 1, kind: input, shape index: {}]   ;;  %s160_s2 = inlined_call_operand.vmem [shape: f32[1,32], index: 2, kind: input, shape index: {}]   ;;  %s161_s3 = inlined_call_operand.vmem [shape: f32[1,32], index: 3, kind: input, shape index: {}]   ;;  %s162_s4 = inlined_call_operand.vmem [shape: f32[16,32], index: 4, kind: output, shape index: {}]  }
   0x1   :  { %v17_v0 = vld [vmem:[%s158_s0] sm:$0xff]  ;;  %v18_v3 = vld [vmem:[%s158_s0 + $0x8] sm:$0xff]  ;;  %96 = vrcp.f32 %v102_v8 }
   0x2   :  { %v19_v1 = vld [vmem:[%s159_s1] sm:$0xff]  ;;  %v20_v4 = vld [vmem:[%s159_s1 + $0x8] sm:$0xff] }
   0x3   :  { %v21_v2 = vadd.f32 %v19_v1, %v17_v0  ;;  %v22_v6 = vadd.f32 %v20_v4, %v18_v3  ;;  %v94_v39 = vld [vmem:[%s160_s2] ss:$0 sm:$0xff] }
   0x4   :  { %v95_v42 = vld [vmem:[%s161_s3] ss:$0 sm:$0xff] }
   0x5   :  { %v24_v5 = vsel %vm23_vm0, %v21_v2, 0.0  ;;  %v27_v7 = vsel %vm23_vm0, %v22_v6, 0.0 }
   0x6   :  { %25 = vadd.xlane.f32.xlu0 %v24_v5 }
   0x7   :  { %v97_v9 = vpop.eup %96 }
   0x8   :  { %v31_v10 = vmul.f32 32.0, %v97_v9  ;;  %vm35_vm1 = vweird.f32 %v97_v9 }
   0xa   :  { %v32_v11 = vsub.f32 1.0, %v31_v10 }
   0xc   :  { %v33_v12 = vmul.f32 %v97_v9, %v32_v11 }
   0xe   :  { %28 = vadd.xlane.f32.xlu0 %v27_v7  ;;  %v34_v13 = vadd.f32 %v97_v9, %v33_v12 }
  0x10   :  { %v36_v14 = vsel %vm35_vm1, %v97_v9, %v34_v13 }
  0x79   :  { %v26_v15 = vpop.xlane.xlu0 %25 }
  0x7a   :  { %v37_v16 = vmul.f32 %v36_v14, %v26_v15 }
  0x7c   :  { %v39_v17 = vsub.f32 %v21_v2, %v37_v16 }
  0x7e   :  { %v41_v18 = vmul.f32 %v39_v17, %v39_v17 }
  0x80   :  { %v43_v19 = vsel %vm23_vm0, %v41_v18, 0.0 }
  0x81   :  { %44 = vadd.xlane.f32.xlu1 %v43_v19  ;;  %v29_v20 = vpop.xlane.xlu0 %28 }
  0x82   :  { %v38_v21 = vmul.f32 %v36_v14, %v29_v20 }
  0x84   :  { %v40_v22 = vsub.f32 %v22_v6, %v38_v21 }
  0x86   :  { %v42_v23 = vmul.f32 %v40_v22, %v40_v22 }
  0x88   :  { %v46_v24 = vsel %vm23_vm0, %v42_v23, 0.0 }
  0x89   :  { %47 = vadd.xlane.f32.xlu1 %v46_v24 }
  0xf4   :  { %v45_v25 = vpop.xlane.xlu1 %44 }
  0xf5   :  { %v49_v26 = vmul.f32 %v45_v25, %v36_v14 }
  0xf7   :  { %v51_v27 = vadd.f32 1e-05, %v49_v26 }
  0xf9   :  { %98 = vrsqrt.f32 %v51_v27  ;;  %vm59_vm3 = vweird.f32 %v51_v27 }
  0xfc   :  { %v48_v28 = vpop.xlane.xlu1 %47 }
  0xfd   :  { %v50_v29 = vmul.f32 %v48_v28, %v36_v14 }
  0xff   :  { %v99_v30 = vpop.eup %98  ;;  %v52_v31 = vadd.f32 1e-05, %v50_v29 }
 0x100   :  { %v54_v32 = vmul.f32 %v99_v30, %v51_v27  ;;  %vm60_vm2 = vweird.f32 %v99_v30 }
 0x101   :  { %100 = vrsqrt.f32 %v52_v31  ;;  %vm61_vm4 = vmor %vm59_vm3, %vm60_vm2  ;;  %vm69_vm6 = vweird.f32 %v52_v31 }
 0x102   :  { %v55_v33 = vmul.f32 %v99_v30, %v54_v32 }
 0x104   :  { %v56_v34 = vmul.f32 0.5, %v55_v33 }
 0x106   :  { %v57_v35 = vsub.f32 1.5, %v56_v34 }
 0x107   :  { %v101_v36 = vpop.eup %100 }
 0x108   :  { %v58_v37 = vmul.f32 %v99_v30, %v57_v35  ;;  %v64_v38 = vmul.f32 %v101_v36, %v52_v31  ;;  %vm70_vm5 = vweird.f32 %v101_v36 }
 0x109   :  { %vm71_vm7 = vmor %vm69_vm6, %vm70_vm5 }
 0x10a   :  { %v62_v40 = vsel %vm61_vm4, %v99_v30, %v58_v37  ;;  %v65_v41 = vmul.f32 %v101_v36, %v64_v38 }
 0x10b   :  { %v73_v43 = vmul.f32 %v62_v40, %v39_v17 }
 0x10c   :  { %v66_v44 = vmul.f32 0.5, %v65_v41 }
 0x10d   :  { %v79_v45 = vmul.f32 %v94_v39, %v73_v43 }
 0x10e   :  { %v67_v46 = vsub.f32 1.5, %v66_v44 }
 0x10f   :  { %v85_v47 = vadd.f32 %v95_v42, %v79_v45 }
 0x110   :  { %v68_v48 = vmul.f32 %v101_v36, %v67_v46 }
 0x111   :  { %87 = vst.msk [vmem:[%s162_s4] sm:$0xff] %vm23_vm0, %v85_v47 }
 0x112   :  { %v72_v49 = vsel %vm71_vm7, %v101_v36, %v68_v48 }
 0x113   :  { %v74_v50 = vmul.f32 %v72_v49, %v40_v22 }
 0x115   :  { %v80_v51 = vmul.f32 %v94_v39, %v74_v50 }
 0x117   :  { %v86_v52 = vadd.f32 %v95_v42, %v80_v51 }
 0x119   :  { %88 = vst.msk [vmem:[%s162_s4 + $0x8] sm:$0xff] %vm23_vm0, %v86_v52 }

// kernel: decoder_forward.34
= control target key start
LH: loop header
LB: loop body
LE: loop exit
PB: predicated region body
PF: predicated region fallthrough
CT: control target
= control target key end

     0   :  { %vm42_vm0 = vcmask 261120   ;;  %s136_s1 = inlined_call_operand.vmem [shape: bf16[32,128], index: 1, kind: input, shape index: {}]   ;;  %s137_s0 = inlined_call_operand.vmem [shape: f32[16,32], index: 0, kind: input, shape index: {}]   ;;  %s138_s2 = inlined_call_operand.vmem [shape: f32[1,128], index: 2, kind: input, shape index: {}]   ;;  %s139_s3 = inlined_call_operand.vmem [shape: f32[16,128], index: 3, kind: output, shape index: {}]  }
   0x1   :  { %v93_v0 = vld [vmem:[%s136_s1 + $0x8] sm:$0xff]  ;;  %v92_v1 = vld [vmem:[%s136_s1] sm:$0xff] }
   0x2   :  { %52 = vmatpush.bf16.msra.mxu0 %v93_v0  ;;  %v23_v2 = vld [vmem:[%s137_s0] sm:$0xff]  ;;  %v24_v3 = vld [vmem:[%s137_s0 + $0x8] sm:$0xff] }
   0x3   :  { %v25_v4 = vpack.c.bf16 %v24_v3, %v23_v2  ;;  %v94_v5 = vld [vmem:[%s138_s2] ss:$0 sm:$0xff] }
   0x6   :  { %53 = vmatpush.bf16.msra.mxu0 %v92_v1 }
   0x9   :  { %91 = vmatmul.msk.bf16.vlgmr.msra.gmra.mxu0 %vm42_vm0, %v25_v4 }
  0x86   :  { %v55_v6 = vpop.f32.mrf.mxu0 }
  0x87   :  { %v73_v7 = vadd.f32 %v94_v5, %v55_v6 }
  0x89   :  { %v75_v8 = vmax.f32 %v73_v7, 0.0 }
  0x8b   :  { %77 = vst [vmem:[%s139_s3] sm:$0xff] %v75_v8 }
  0x8e   :  { %v57_v9 = vpop.f32.mrf.mxu0 }
  0x8f   :  { %v74_v10 = vadd.f32 %v94_v5, %v57_v9 }
  0x91   :  { %v76_v11 = vmax.f32 %v74_v10, 0.0 }
  0x93   :  { %78 = vst [vmem:[%s139_s3 + $0x8] sm:$0xff] %v76_v11 }

// kernel: decoder_forward.26
= control target key start
LH: loop header
LB: loop body
LE: loop exit
PB: predicated region body
PF: predicated region fallthrough
CT: control target
= control target key end

     0   :  { %s687_s15 = smov 0   ;;  %s761_s0 = inlined_call_operand.vmem [shape: f32[2,8,32], index: 0, kind: input, shape index: {}]   ;;  %s762_s1 = inlined_call_operand.vmem [shape: f32[2,8,32], index: 1, kind: input, shape index: {}]   ;;  %s763_s2 = inlined_call_operand.vmem [shape: f32[2,8,32], index: 2, kind: input, shape index: {}]   ;;  %s764_s3 = inlined_call_operand.vmem [shape: f32[2,8,8], index: 3, kind: input, shape index: {}]   ;;  %s765_s4 = inlined_call_operand.vmem [shape: f32[2,8,32], index: 4, kind: output, shape index: {}]  }
   0x1 LB: > { %s598_s16 = sadd.s32 4294967295, %s654_s15   ;;  %p602_p0 = scmp.ge.s32.totalorder %s654_s15, 1  ;;  %s654_s15 = sphi %s687_s15, %s14_s15  }
   0x2   : > { %p188_p1 = scmp.lt.s32.totalorder %s654_s15, 3 }
   0x4   : > { %p189_p2 = pnand %p602_p0, %p188_p1 }
   0x5   : > { %p224_p3 = scmp.lt.s32.totalorder (!%p189_p2), %s598_s16, 1  ;;  %s656_s24 = smov (!%p189_p2), 112  }
   0x6   : > { %192 = sbr.rel (%p189_p2) target bundleno = 1083 (0x43b), region = 36  ;;  %s657_s25 = smov (!%p189_p2), 104  }
   0x7   : > { %s658_s29 = smov (!%p189_p2), 120   ;;  %s659_s7 = smov (!%p189_p2), 8  }
   0x8   : > { %s660_s8 = smov (!%p189_p2), 16   ;;  %s661_s9 = smov (!%p189_p2), 24  }
   0xb   : > { %s767_s16 = smov (!%p224_p3, %s598_s16), 1  ;;  %vm252_vm0 = vcmask 64512   ;;  %vm290_vm2 = vcmask 1043456   ;;  %vm503_vm3 = vcmask 130048   ;;  %vm505_vm4 = vcmask 195584  }
   0xc   : > { %s695_s17 = sshll.u32 %s767_s16, 3  ;;  %vm507_vm5 = vcmask 261120  }
   0xd   : > { %s231_s20 = scalar_lea.vmem %s762_s1, %s695_s17  ;;  %s227_s23 = scalar_lea.vmem %s761_s0, %s695_s17 }
   0xe   : > { %v247_v0 = vld [vmem:[%s231_s20] sm:$0xff]  ;;  %s239_s28 = scalar_lea.vmem %s764_s3, %s695_s17  ;;  %s235_s6 = scalar_lea.vmem %s763_s2, %s695_s17 }
   0xf   : > { %v248_v1 = vpack.c.bf16 %v247_v0, %v247_v0  ;;  %v245_v3 = vld [vmem:[%s227_s23] sm:$0xff]  ;;  %s243_s12 = scalar_lea.vmem %s765_s4, %s695_s17 }
  0x10   : > { %v246_v4 = vpack.c.bf16 %v245_v3, %v245_v3  ;;  %v251_v9 = vld [vmem:[%s239_s28] sm:$0xff] }
  0x11   : > { %v257_v2 = vsel %vm252_vm0, %v248_v1, 0  ;;  %v313_v5 = vunpack.c.l.b16 %v248_v1  ;;  %vm273_vm1 = vcmp.eq.f32.partialorder %v251_v9, 0.0  ;;  %v249_v25 = vld [vmem:[%s235_s6] sm:$0xff] }
  0x12   : > { %266 = vmatpush.bf16.xpose.msra.mxu0 %v257_v2  ;;  %v308_v7 = vunpack.c.l.b16 %v246_v4  ;;  %v250_v26 = vpack.c.bf16 %v249_v25, %v249_v25 }
  0x13   : > { %v314_v6 = vpack.c.b16 %v313_v5, %v313_v5 }
  0x14   : > { %v309_v8 = vpack.c.b16 %v308_v7, %v308_v7  ;;  %v292_v27 = vsel %vm290_vm2, %v250_v26, 0  ;;  %v351_v53 = vunpack.c.l.b16 %v250_v26 }
  0x15   : > { %376 = vrot.lane.b32.xlu2 %v314_v6, %s656_s24  ;;  %301 = vmatpush.bf16.msra.mxu1 %v292_v27 }
  0x16   : > { %v352_v54 = vpack.c.b16 %v351_v53, %v351_v53 }
  0x19   : > { %608 = vmatmul.msk.bf16.vlgmr.msra.gmra.mxu0 %vm252_vm0, %v246_v4 }
  0x1d   : > { %434 = vrot.lane.b32.xlu2 %v314_v6, %s657_s25 }
  0x25   : > { %374 = vrot.lane.b32.xlu2 %v309_v8, %s656_s24 }
  0x2d   : > { %432 = vrot.lane.b32.xlu2 %v309_v8, %s657_s25 }
  0x6f   : > { %v377_v15 = vpop.permute.xlu2 %376 }
  0x70   : > { %v382_v28 = vsel %vm252_vm0, %v377_v15, 0 }
  0x71   : > { %391 = vmatpush.bf16.xpose.msrb.mxu1 %v382_v28 }
  0x77   : > { %v435_v16 = vpop.permute.xlu2 %434 }
  0x78   : > { %v440_v21 = vsel %vm252_vm0, %v435_v16, 0 }
  0x79   : > { %449 = vmatpush.bf16.xpose.msrb.mxu0 %v440_v21 }
  0x7f   : > { %v375_v20 = vpop.permute.xlu2 %374 }
  0x87   : > { %v433_v24 = vpop.permute.xlu2 %432 }
  0x88   : > { %614 = vmatmul.msk.bf16.vlgmr.msrb.gmra.mxu0 %vm252_vm0, %v433_v24 }
  0x96   : > { %v268_v10 = vpop.f32.mrf.mxu0 }
  0x97   : > { %v272_v11 = vmul.f32 0.35355338, %v268_v10 }
  0x99   : > { %v274_v12 = vsel %vm273_vm1, -1e+09, %v272_v11 }
  0x9a   : > { %v275_v13 = vsel %vm252_vm0, %v274_v12, -inf }
  0x9b   : > { %276 = vmax.xlane.f32.xlu0 %v275_v13 }
  0x9e   : > { %v270_v14 = vpop.f32.mrf.mxu0 }
  0xaf   : > { %315 = vrot.lane.b32.xlu0 %v314_v6, %s658_s29 }
 0x105   : > { %v451_v35 = vpop.f32.mrf.mxu0 }
 0x106   : > { %v455_v36 = vmul.f32 0.35355338, %v451_v35 }
 0x108   : > { %v456_v37 = vsel %vm273_vm1, -1e+09, %v455_v36 }
 0x109   : > { %v457_v38 = vsel %vm252_vm0, %v456_v37, -inf }
 0x10d   : > { %v453_v39 = vpop.f32.mrf.mxu0 }
 0x10e   : > { %v277_v17 = vpop.xlane.xlu0 %276 }
 0x10f   : > { %v278_v18 = vsub.f32 %v274_v12, %v277_v17 }
 0x111   : > { %v279_v19 = vmul.f32 1.442695, %v278_v18 }
 0x113   : > { %632 = vpow2.f32 %v279_v19 }
 0x119   : > { %v633_v22 = vpop.eup %632 }
 0x11a   : > { %v281_v23 = vsel %vm252_vm0, %v633_v22, 0.0 }
 0x11b   : > { %282 = vadd.xlane.f32.xlu1 %v281_v23 }
 0x121   : > { %v316_v29 = vpop.permute.xlu0 %315 }
 0x122   : > { %v321_v30 = vsel %vm252_vm0, %v316_v29, 0 }
 0x123   : > { %330 = vmatpush.bf16.xpose.msra.mxu2 %v321_v30 }
 0x134   : > { %310 = vrot.lane.b32.xlu1 %v309_v8, %s658_s29 }
 0x15e   : > { %458 = vmax.xlane.f32.xlu1 %v457_v38 }
 0x18e   : > { %v283_v31 = vpop.xlane.xlu1 %282 }
 0x18f   : > { %634 = vrcp.f32 %v283_v31 }
 0x195   : > { %v635_v32 = vpop.eup %634 }
 0x196   : > { %v285_v33 = vmul.f32 %v635_v32, %v633_v22 }
 0x198   : > { %v286_v34 = vpack.c.bf16 %v285_v33, %v285_v33 }
 0x19a   : > { %609 = vmatmul.msk.bf16.vlgmr.msra.gmra.mxu1 %vm252_vm0, %v286_v34 }
 0x1a6   : > { %v311_v40 = vpop.permute.xlu1 %310 }
 0x1a7   : > { %610 = vmatmul.msk.bf16.vlgmr.msra.gmra.mxu2 %vm252_vm0, %v311_v40 }
 0x1aa   : > { %612 = vmatmul.msk.bf16.vlgmr.msrb.gmra.mxu1 %vm252_vm0, %v375_v20 }
 0x1d1   : > { %v459_v57 = vpop.xlane.xlu1 %458 }
 0x1d2   : > { %v460_v61 = vsub.f32 %v456_v37, %v459_v57 }
 0x1d4   : > { %v461_v63 = vmul.f32 1.442695, %v460_v61 }
 0x217   : > { %v734_v41 = vpop.f32.mrf.mxu1 }
 0x21f   : > { %v305_v42 = vpop.f32.mrf.mxu1 }
 0x227   : > { %v393_v43 = vpop.f32.mrf.mxu1 }
 0x228   : > { %v397_v44 = vmul.f32 0.35355338, %v393_v43 }
 0x22a   : > { %v332_v45 = vpop.f32.mrf.mxu2  ;;  %v398_v46 = vsel %vm273_vm1, -1e+09, %v397_v44 }
 0x22b   : > { %v336_v47 = vmul.f32 0.35355338, %v332_v45  ;;  %v399_v48 = vsel %vm252_vm0, %v398_v46, -inf }
 0x22c   : > { %400 = vmax.xlane.f32.xlu2 %v399_v48 }
 0x22d   : > { %v337_v49 = vsel %vm273_vm1, -1e+09, %v336_v47 }
 0x22e   : > { %v338_v50 = vsel %vm252_vm0, %v337_v49, -inf }
 0x22f   : > { %v395_v51 = vpop.f32.mrf.mxu1  ;;  %339 = vmax.xlane.f32.xlu0 %v338_v50 }
 0x232   : > { %v334_v52 = vpop.f32.mrf.mxu2 }
 0x244   : > { %353 = vrot.lane.b32.xlu2 %v352_v54, %s658_s29 }
 0x29f   : > { %v401_v55 = vpop.xlane.xlu2 %400 }
 0x2a0   : > { %v402_v56 = vsub.f32 %v398_v46, %v401_v55 }
 0x2a2   : > { %v403_v58 = vmul.f32 1.442695, %v402_v56  ;;  %v340_v59 = vpop.xlane.xlu0 %339 }
 0x2a3   : > { %v341_v60 = vsub.f32 %v337_v49, %v340_v59 }
 0x2a4   : > { %636 = vpow2.f32 %v403_v58 }
 0x2a5   : > { %v342_v62 = vmul.f32 1.442695, %v341_v60 }
 0x2a7   : > { %638 = vpow2.f32 %v342_v62  ;;  %v354_v6 = vpop.permute.xlu2 %353 }
 0x2a8   : > { %640 = vpow2.f32 %v461_v63  ;;  %v359_v7 = vsel %vm290_vm2, %v354_v6, 0 }
 0x2a9   : > { %368 = vmatpush.bf16.msra.mxu3 %v359_v7 }
 0x2aa   : > { %v637_v0 = vpop.eup %636 }
 0x2ab   : > { %v405_v1 = vsel %vm252_vm0, %v637_v0, 0.0 }
 0x2ac   : > { %406 = vadd.xlane.f32.xlu1 %v405_v1 }
 0x2ad   : > { %v639_v2 = vpop.eup %638 }
 0x2ae   : > { %v344_v3 = vsel %vm252_vm0, %v639_v2, 0.0  ;;  %v641_v4 = vpop.eup %640 }
 0x2af   : > { %345 = vadd.xlane.f32.xlu0 %v344_v3  ;;  %v463_v5 = vsel %vm252_vm0, %v641_v4, 0.0 }
 0x2b7   : > { %464 = vadd.xlane.f32.xlu0 %v463_v5 }
 0x2c5   : > { %411 = vrot.lane.b32.xlu1 %v352_v54, %s656_s24 }
 0x2cb   : > { %469 = vrot.lane.b32.xlu0 %v352_v54, %s657_s25 }
 0x31f   : > { %v407_v11 = vpop.xlane.xlu1 %406 }
 0x322   : > { %v346_v8 = vpop.xlane.xlu0 %345 }
 0x323   : > { %642 = vrcp.f32 %v346_v8 }
 0x324   : > { %644 = vrcp.f32 %v407_v11 }
 0x329   : > { %v643_v9 = vpop.eup %642 }
 0x32a   : > { %v348_v10 = vmul.f32 %v643_v9, %v639_v2  ;;  %v465_v13 = vpop.xlane.xlu0 %464  ;;  %v645_v14 = vpop.eup %644 }
 0x32b   : > { %646 = vrcp.f32 %v465_v13  ;;  %v409_v16 = vmul.f32 %v645_v14, %v637_v0 }
 0x32c   : > { %v349_v12 = vpack.c.bf16 %v348_v10, %v348_v10 }
 0x32d   : > { %v410_v20 = vpack.c.bf16 %v409_v16, %v409_v16 }
 0x32e   : > { %611 = vmatmul.msk.bf16.vlgmr.msra.gmra.mxu3 %vm252_vm0, %v349_v12 }
 0x331   : > { %v647_v18 = vpop.eup %646 }
 0x332   : > { %v467_v19 = vmul.f32 %v647_v18, %v641_v4 }
 0x334   : > { %v468_v23 = vpack.c.bf16 %v467_v19, %v467_v19 }
 0x337   : > { %v412_v15 = vpop.permute.xlu1 %411 }
 0x338   : > { %v417_v17 = vsel %vm290_vm2, %v412_v15, 0 }
 0x339   : > { %426 = vmatpush.bf16.msrb.mxu3 %v417_v17 }
 0x33d   : > { %v470_v21 = vpop.permute.xlu0 %469 }
 0x33e   : > { %613 = vmatmul.msk.bf16.vlgmr.msrb.gmra.mxu3 %vm252_vm0, %v410_v20  ;;  %v475_v22 = vsel %vm290_vm2, %v470_v21, 0 }
 0x33f   : > { %484 = vmatpush.bf16.msrb.mxu2 %v475_v22 }
 0x342   : > { %615 = vmatmul.msk.bf16.vlgmr.msrb.gmra.mxu2 %vm252_vm0, %v468_v23 }
 0x3b1   : > { %v370_v24 = vpop.f32.mrf.mxu3 }
 0x3b2   : > { %491 = vrot.lane.b32.xlu2 %v370_v24, %s659_s7 }
 0x3b9   : > { %v372_v25 = vpop.f32.mrf.mxu3 }
 0x3c1   : > { %v428_v26 = vpop.f32.mrf.mxu3 }
 0x3c2   : > { %495 = vrot.lane.b32.xlu2 %v428_v26, %s660_s8 }
 0x3c5   : > { %v486_v27 = vpop.f32.mrf.mxu2 }
 0x3c6   : > { %499 = vrot.lane.b32.xlu0 %v486_v27, %s661_s9 }
 0x3c9   : > { %v430_v28 = vpop.f32.mrf.mxu3 }
 0x3cd   : > { %v488_v29 = vpop.f32.mrf.mxu2 }
 0x40c   : > { %v492_v30 = vpop.permute.xlu2 %491 }
 0x40d   : > { %v502_v32 = vsel %vm252_vm0, %v734_v41, %v492_v30 }
 0x41c   : > { %v496_v31 = vpop.permute.xlu2 %495 }
 0x41d   : > { %v504_v33 = vsel %vm503_vm3, %v502_v32, %v496_v31 }
 0x438   : > { %v500_v34 = vpop.permute.xlu0 %499 }
 0x439   : > { %v506_v35 = vsel %vm505_vm4, %v504_v33, %v500_v34 }
 0x43a   : > { %508 = vst.msk [vmem:[%s243_s12] sm:$0xff] %vm507_vm5, %v506_v35 }
 0x43b PF: > { %s14_s15 = sadd.s32 1, %s654_s15  }
 0x43c   : > { %p11_p4 = scmp.ge.s32.totalorder %s14_s15, 4  }
 0x43e   :  { %13 = sbr.rel (!%p11_p4) target bundleno = 1 (0x1), region = 75 }

// kernel: decoder_forward.35
= control target key start
LH: loop header
LB: loop body
LE: loop exit
PB: predicated region body
PF: predicated region fallthrough
CT: control target
= control target key end

     0   :  { %vm58_vm0 = vcmask 523264   ;;  %s166_s1 = inlined_call_operand.vmem [shape: bf16[64,128], index: 1, kind: input, shape index: {}]   ;;  %s167_s2 = inlined_call_operand.vmem [shape: f32[1,128], index: 2, kind: input, shape index: {}]   ;;  %s168_s0 = inlined_call_operand.vmem [shape: f32[16,64], index: 0, kind: input, shape index: {}]   ;;  %s169_s3 = inlined_call_operand.vmem [shape: f32[16,128], index: 3, kind: output, shape index: {}]  }
   0x1   :  { %v117_v0 = vld [vmem:[%s166_s1 + $0x18] sm:$0xff]  ;;  %v116_v1 = vld [vmem:[%s166_s1 + $0x10] sm:$0xff]  ;;  %v115_v2 = vld [vmem:[%s166_s1 + $0x8] sm:$0xff] }
   0x2   :  { %66 = vmatpush.bf16.msra.mxu0 %v117_v0  ;;  %v114_v3 = vld [vmem:[%s166_s1] sm:$0xff]  ;;  %v24_v5 = vld [vmem:[%s168_s0 + $0x8] sm:$0xff] }
   0x3   :  { %v23_v4 = vld [vmem:[%s168_s0] sm:$0xff] }
   0x4   :  { %v25_v6 = vpack.c.bf16 %v24_v5, %v23_v4  ;;  %v118_v7 = vld [vmem:[%s167_s2] ss:$0 sm:$0xff] }
   0x6   :  { %67 = vmatpush.bf16.msra.mxu0 %v116_v1 }
   0xa   :  { %68 = vmatpush.bf16.msra.mxu0 %v115_v2 }
   0xe   :  { %69 = vmatpush.bf16.msra.mxu0 %v114_v3 }
  0x11   :  { %113 = vmatmul.msk.bf16.vlgmr.msra.gmra.mxu0 %vm58_vm0, %v25_v6 }
  0x8e   :  { %v71_v8 = vpop.f32.mrf.mxu0 }
  0x8f   :  { %v89_v9 = vadd.f32 %v118_v7, %v71_v8 }
  0x91   :  { %91 = vst [vmem:[%s169_s3] sm:$0xff] %v89_v9 }
  0x96   :  { %v73_v10 = vpop.f32.mrf.mxu0 }
  0x97   :  { %v90_v11 = vadd.f32 %v118_v7, %v73_v10 }
  0x99   :  { %92 = vst [vmem:[%s169_s3 + $0x8] sm:$0xff] %v90_v11 }

</bundles_post_ra>
